<compile_context>
chip_gen: v5e
topology: v5e:2x2
jax: 0.10.0
libtpu: 0.0.40
codegen_flags: <defaults>
</compile_context>

<pallas_src>
import functools

import jax
import jax.numpy as jnp
from jax import lax
from jax.experimental import pallas as pl
from jax.experimental.pallas import tpu as pltpu


# ----------------------------- model dims -----------------------------------
B = 2          # batch
C = 4          # latent channels (UNet in/out channels)
H = 16         # spatial
W = 16
HW = H * W     # tokens per image
TD = 32        # timestep embedding dim
D = 32         # internal model / attention dim
S = 8          # context sequence length
DCTX = 32      # context feature dim


def _silu(x):
    return x * jax.nn.sigmoid(x)


# ----------------------------- Pallas kernel --------------------------------
def diffusion_kernel(x_ref, tq_ref, ctx_ref, wx_ref, wkvo_ref, wout_ref, bout_ref,
                     o_ref):
    """Fused latent-diffusion core for one lane-block of spatial positions.

    Layouts (tokens on lanes, batch*feature stacked on sublanes):
      x_ref   : (B*C, hw_blk)   latent channels
      tq_ref  : (B*D, 2)        col 0 = t-cond (+bin), col 1 = wq^T t-cond
      ctx_ref : (B*S, DCTX)     cross-attention context
      wx_ref  : (2, B*D, B*C)   block-diag win^T and (win@wq)^T
      wkvo_ref: (DCTX, 2*D)     [wk * 1/sqrt(D) | wv @ wo]
      wout_ref: (B*C, B*D)      block-diag wout^T
      bout_ref: (B*C, 1)
      o_ref   : (B*C, hw_blk)
    """
    f32 = jnp.float32
    nb = ctx_ref.shape[0] // S          # images packed on sublanes (= B)
    dm = tq_ref.shape[0] // nb          # model dim D

    x_all = x_ref[...]                  # (B*C, hw)
    ctx_all = ctx_ref[...]              # (B*S, DCTX)
    tcol = tq_ref[:, 0:1]               # (B*D, 1)
    qcol = tq_ref[:, 1:2]               # (B*D, 1)

    # --- batched input / query projections (block-diagonal weights, prefolded)
    h_all = jnp.dot(wx_ref[0], x_all, preferred_element_type=f32) + tcol   # (B*D, hw)
    q_all = jnp.dot(wx_ref[1], x_all, preferred_element_type=f32) + qcol   # (B*D, hw)

    # --- keys (softmax scale prefolded) and values@wo (wo prefolded), all images at once
    kvo = jnp.dot(ctx_all, wkvo_ref[...], preferred_element_type=f32)      # (B*S, 2*D)

    # --- per-image cross-attention (scores -> softmax -> weighted sum)
    parts = []
    for b in range(nb):
        q_b = q_all[b * dm:(b + 1) * dm, :]          # (D, hw)  tile-aligned slice
        k_b = kvo[b * S:(b + 1) * S, :dm]            # (S, D)   pre-scaled keys
        vo_b = kvo[b * S:(b + 1) * S, dm:]           # (S, D)   v @ wo

        s_b = jnp.dot(k_b, q_b, preferred_element_type=f32)                # (S, hw)
        s_b = s_b - jnp.max(s_b, axis=0, keepdims=True)
        p_b = jnp.exp(s_b)
        p_b = p_b * pl.reciprocal(jnp.sum(p_b, axis=0, keepdims=True), approx=True)

        # attn^T @ ... without materializing a transpose: (D, hw) = vo^T @ p
        attn_b = lax.dot_general(vo_b, p_b, (((0,), (0,)), ((), ())),
                                 preferred_element_type=f32)               # (D, hw)
        parts.append(_silu(h_all[b * dm:(b + 1) * dm, :] + attn_b))

    h_act = parts[0] if nb == 1 else jnp.concatenate(parts, axis=0)        # (B*D, hw)

    # --- output head: one block-diagonal matmul back to latent channels
    out_all = jnp.dot(wout_ref[...], h_act, preferred_element_type=f32) + bout_ref[...]
    o_ref[...] = out_all.astype(o_ref.dtype)                               # full-tile store


# ----------------------------- wrapper ---------------------------------------
def timestep_embedding(t, dim):
    half = dim // 2
    freqs = jnp.exp(-jnp.log(10000.0) * jnp.arange(half, dtype=jnp.float32) / half)
    args = t.astype(jnp.float32)[:, None] * freqs[None, :]
    return jnp.concatenate([jnp.cos(args), jnp.sin(args)], axis=-1)  # (B, dim)


def pack_weights(params, nb):
    """Prefold weights for the kernel (block-diagonal / scale / wo folds)."""
    (w1, b1, w2, b2, win, bin_, wq, wk, wv, wo, wout, bout) = params
    eye = jnp.eye(nb, dtype=jnp.float32)
    w_xh_blk = jnp.kron(eye, win.T)                      # (nb*D, nb*C)
    w_xq_blk = jnp.kron(eye, (win @ wq).T)               # (nb*D, nb*C)  folded q path
    wx = jnp.stack([w_xh_blk, w_xq_blk], axis=0)         # (2, nb*D, nb*C)
    scale = float(D) ** -0.5
    wkvo = jnp.concatenate([wk * scale, wv @ wo], axis=1)  # (DCTX, 2*D)
    wout_blk = jnp.kron(eye, wout.T)                     # (nb*C, nb*D)
    bout_col = jnp.tile(bout.reshape(-1, 1), (nb, 1))    # (nb*C, 1)
    return wx, wkvo, wout_blk, bout_col


def _tensorcores_per_chip():
    try:
        kind = jax.devices()[0].device_kind.lower()
    except Exception:
        return 1
    return 2 if any(tag in kind for tag in ("v7", "7x", "v4", "v5p")) else 1


@functools.partial(jax.jit, static_argnames=("hw_block",))
def diffusion_wrapper_forward(x_nchw, time_steps, context, params, kernel_weights,
                              *, hw_block=HW):
    """DiffusionWrapper.forward(x, time_steps, context)."""
    (w1, b1, w2, b2, win, bin_, wq, wk, wv, wo, wout, bout) = params
    wx, wkvo, wout_blk, bout_col = kernel_weights

    b, c, h, w = x_nchw.shape
    hw = h * w
    assert hw % hw_block == 0

    # tokens-on-lanes, batch*channels on sublanes: plain reshapes, no transposes
    x_all = x_nchw.reshape(b * c, hw)                    # (B*C, HW)   full (8,128) tiles
    ctx_all = context.reshape(b * S, DCTX)               # (B*S, DCTX)

    # timestep MLP hoisted out of the kernel (tiny, XLA-trivial); also precompute the
    # q-path conditioning so the kernel only does broadcast adds.
    temb = timestep_embedding(time_steps, TD)            # (B, TD)
    t_h = _silu(temb @ w1 + b1) @ w2 + b2                # (B, D)
    tcond = t_h + bin_                                   # (B, D)  bin folded in
    qcond = tcond @ wq                                   # (B, D)  = (wq^T tcond)^T
    tq = jnp.stack([tcond, qcond], axis=-1).reshape(b * D, 2)   # (B*D, 2)

    nsteps = hw // hw_block
    out = pl.pallas_call(
        diffusion_kernel,
        out_shape=jax.ShapeDtypeStruct((b * c, hw), jnp.float32),
        grid_spec=pltpu.PrefetchScalarGridSpec(
            num_scalar_prefetch=0,
            grid=(nsteps,),
            in_specs=[
                pl.BlockSpec((b * c, hw_block), lambda i: (0, i)),   # latent tokens
                pl.BlockSpec((b * D, 2), lambda i: (0, 0)),          # time/q conditioning
                pl.BlockSpec((b * S, DCTX), lambda i: (0, 0)),       # context
                pl.BlockSpec(wx.shape, lambda i: (0, 0, 0)),         # block-diag x-weights
                pl.BlockSpec(wkvo.shape, lambda i: (0, 0)),          # [wk*scale | wv@wo]
                pl.BlockSpec(wout_blk.shape, lambda i: (0, 0)),      # block-diag out head
                pl.BlockSpec(bout_col.shape, lambda i: (0, 0)),      # out bias column
            ],
            out_specs=pl.BlockSpec((b * c, hw_block), lambda i: (0, i)),
        ),
        compiler_params=pltpu.CompilerParams(
            dimension_semantics=("parallel",),
        ),
    )(x_all, tq, ctx_all, wx, wkvo, wout_blk, bout_col)

    return out.reshape(b, c, h, w)                       # (B, C, H, W)


# ----------------------------- pure-JAX reference ----------------------------
def reference_forward(x_nchw, time_steps, context, params):
    (w1, b1, w2, b2, win, bin_, wq, wk, wv, wo, wout, bout) = params
    b, c, h, w = x_nchw.shape
    x_tok = jnp.transpose(x_nchw, (0, 2, 3, 1)).reshape(b, h * w, c)
    temb = timestep_embedding(time_steps, TD)

    t_h = _silu(temb @ w1 + b1) @ w2 + b2                       # (B, D)
    hidd = x_tok @ win + bin_ + t_h[:, None, :]                 # (B, HW, D)
    q = hidd @ wq
    k = context @ wk
    v = context @ wv
    s = jnp.einsum("bqd,bkd->bqk", q, k) / jnp.sqrt(jnp.float32(D))
    p = jax.nn.softmax(s, axis=-1)
    attn = jnp.einsum("bqk,bkd->bqd", p, v)
    hidd = hidd + attn @ wo
    out_tok = _silu(hidd) @ wout + bout
    return jnp.transpose(out_tok.reshape(b, h, w, c), (0, 3, 1, 2))


# ----------------------------- params init -----------------------------------
def init_params(key):
    ks = jax.random.split(key, 12)
    sc = 0.1

    def lin(k, shape):
        return sc * jax.random.normal(k, shape, dtype=jnp.float32)

    w1 = lin(ks[0], (TD, TD));    b1 = jnp.zeros((1, TD), jnp.float32)
    w2 = lin(ks[1], (TD, D));     b2 = jnp.zeros((1, D), jnp.float32)
    win = lin(ks[2], (C, D));     bin_ = jnp.zeros((1, D), jnp.float32)
    wq = lin(ks[3], (D, D))
    wk = lin(ks[4], (DCTX, D))
    wv = lin(ks[5], (DCTX, D))
    wo = lin(ks[6], (D, D))
    wout = lin(ks[7], (D, C));    bout = jnp.zeros((1, C), jnp.float32)
    return (w1, b1, w2, b2, win, bin_, wq, wk, wv, wo, wout, bout)


# ----------------------------- main -------------------------------------------
if __name__ == "__main__":
    key = jax.random.PRNGKey(0)
    k_x, k_ctx, k_p = jax.random.split(key, 3)

    x = jax.random.normal(k_x, (B, C, H, W), dtype=jnp.float32)          # NCHW
    time_steps = jnp.array([3, 17], dtype=jnp.int32)                     # (B,)
    context = jax.random.normal(k_ctx, (B, S, DCTX), dtype=jnp.float32)  # (B, S, Dctx)
    params = init_params(k_p)
    kernel_weights = pack_weights(params, B)

    # Grid strategy: split spatial positions (lanes), never the batch, so every
    # load/store stays a full (8,128) tile.  Multi-TC chips (v7x/v5p/v4) get two
    # 128-lane blocks (one per core); single-TC chips (v5e/v6e) do it in one step.
    # At ~1 MFLOP/image this choice should ideally be benchmarked per generation.
    hw_block = HW // 2 if _tensorcores_per_chip() >= 2 else HW

    out = diffusion_wrapper_forward(x, time_steps, context, params, kernel_weights,
                                    hw_block=hw_block)
    out = jax.block_until_ready(out)

    ref = reference_forward(x, time_steps, context, params)
    assert out.shape == (B, C, H, W)
    # tolerance accommodates the EUP approximate reciprocal in the softmax denominator
    assert jnp.allclose(out, ref, atol=1e-3, rtol=1e-3), "mismatch vs reference"

    print("KERNEL_OK")
</pallas_src>

<mosaic_0001>
module attributes {stable_mosaic.version = 11 : i64} {
  func.func @diffusion_kernel(%arg0: i32, %arg1: memref<8x256xf32, #tpu.memory_space<vmem>>, %arg2: memref<64x2xf32, #tpu.memory_space<vmem>>, %arg3: memref<16x32xf32, #tpu.memory_space<vmem>>, %arg4: memref<2x64x8xf32, #tpu.memory_space<vmem>>, %arg5: memref<32x64xf32, #tpu.memory_space<vmem>>, %arg6: memref<8x64xf32, #tpu.memory_space<vmem>>, %arg7: memref<8x1xf32, #tpu.memory_space<vmem>>, %arg8: memref<8x256xf32, #tpu.memory_space<vmem>>) attributes {dimension_semantics = [#tpu.dimension_semantics<parallel>], iteration_bounds = array<i64: 1>, scalar_prefetch = 0 : i64, scratch_operands = 0 : i64, tpu.core_type = #tpu.core_type<tc>, window_params = [{transform_indices = @transform_0, window_bounds = array<i64: 8, 256>}, {pipeline_mode = #tpu.pipeline_mode<synchronous>, transform_indices = @transform_1, window_bounds = array<i64: 64, 2>}, {pipeline_mode = #tpu.pipeline_mode<synchronous>, transform_indices = @transform_2, window_bounds = array<i64: 16, 32>}, {pipeline_mode = #tpu.pipeline_mode<synchronous>, transform_indices = @transform_3, window_bounds = array<i64: 2, 64, 8>}, {pipeline_mode = #tpu.pipeline_mode<synchronous>, transform_indices = @transform_4, window_bounds = array<i64: 32, 64>}, {pipeline_mode = #tpu.pipeline_mode<synchronous>, transform_indices = @transform_5, window_bounds = array<i64: 8, 64>}, {pipeline_mode = #tpu.pipeline_mode<synchronous>, transform_indices = @transform_6, window_bounds = array<i64: 8, 1>}, {transform_indices = @transform_7, window_bounds = array<i64: 8, 256>}]} {
    %c0 = arith.constant 0 : index
    %c0_0 = arith.constant 0 : index
    %0 = vector.load %arg1[%c0, %c0_0] : memref<8x256xf32, #tpu.memory_space<vmem>>, vector<8x256xf32>
    %c0_1 = arith.constant 0 : index
    %c0_2 = arith.constant 0 : index
    %1 = vector.load %arg3[%c0_1, %c0_2] : memref<16x32xf32, #tpu.memory_space<vmem>>, vector<16x32xf32>
    %c0_3 = arith.constant 0 : index
    %c0_4 = arith.constant 0 : index
    %2 = vector.load %arg2[%c0_3, %c0_4] : memref<64x2xf32, #tpu.memory_space<vmem>>, vector<64x1xf32>
    %c0_5 = arith.constant 0 : index
    %c1 = arith.constant 1 : index
    %3 = vector.load %arg2[%c0_5, %c1] : memref<64x2xf32, #tpu.memory_space<vmem>>, vector<64x1xf32>
    %c0_6 = arith.constant 0 : index
    %c0_7 = arith.constant 0 : index
    %c0_8 = arith.constant 0 : index
    %4 = vector.load %arg4[%c0_6, %c0_7, %c0_8] : memref<2x64x8xf32, #tpu.memory_space<vmem>>, vector<1x64x8xf32>
    %5 = vector.shape_cast %4 : vector<1x64x8xf32> to vector<64x8xf32>
    %cst = arith.constant dense<0.000000e+00> : vector<64x256xf32>
    %6 = tpu.matmul %5, %0, %cst {dimension_numbers = #tpu.dot_dimension_numbers<[1], [0], [0], [1], [0, 0, 1, 1], [], []>} : vector<64x8xf32>, vector<8x256xf32>, vector<64x256xf32> -> vector<64x256xf32>
    %7 = vector.broadcast %2 : vector<64x1xf32> to vector<64x256xf32>
    %8 = arith.addf %6, %7 : vector<64x256xf32>
    %c1_9 = arith.constant 1 : index
    %c0_10 = arith.constant 0 : index
    %c0_11 = arith.constant 0 : index
    %9 = vector.load %arg4[%c1_9, %c0_10, %c0_11] : memref<2x64x8xf32, #tpu.memory_space<vmem>>, vector<1x64x8xf32>
    %10 = vector.shape_cast %9 : vector<1x64x8xf32> to vector<64x8xf32>
    %cst_12 = arith.constant dense<0.000000e+00> : vector<64x256xf32>
    %11 = tpu.matmul %10, %0, %cst_12 {dimension_numbers = #tpu.dot_dimension_numbers<[1], [0], [0], [1], [0, 0, 1, 1], [], []>} : vector<64x8xf32>, vector<8x256xf32>, vector<64x256xf32> -> vector<64x256xf32>
    %12 = vector.broadcast %3 : vector<64x1xf32> to vector<64x256xf32>
    %13 = arith.addf %11, %12 : vector<64x256xf32>
    %c0_13 = arith.constant 0 : index
    %c0_14 = arith.constant 0 : index
    %14 = vector.load %arg5[%c0_13, %c0_14] : memref<32x64xf32, #tpu.memory_space<vmem>>, vector<32x64xf32>
    %cst_15 = arith.constant dense<0.000000e+00> : vector<16x64xf32>
    %15 = tpu.matmul %1, %14, %cst_15 {dimension_numbers = #tpu.dot_dimension_numbers<[1], [0], [0], [1], [0, 0, 1, 1], [], []>} : vector<16x32xf32>, vector<32x64xf32>, vector<16x64xf32> -> vector<16x64xf32>
    %16 = vector.extract_strided_slice %13 {offsets = [0, 0], sizes = [32, 256], strides = [1, 1]} : vector<64x256xf32> to vector<32x256xf32>
    %17 = vector.extract_strided_slice %15 {offsets = [0, 0], sizes = [8, 32], strides = [1, 1]} : vector<16x64xf32> to vector<8x32xf32>
    %18 = vector.extract_strided_slice %15 {offsets = [0, 32], sizes = [8, 32], strides = [1, 1]} : vector<16x64xf32> to vector<8x32xf32>
    %cst_16 = arith.constant dense<0.000000e+00> : vector<8x256xf32>
    %19 = tpu.matmul %17, %16, %cst_16 {dimension_numbers = #tpu.dot_dimension_numbers<[1], [0], [0], [1], [0, 0, 1, 1], [], []>} : vector<8x32xf32>, vector<32x256xf32>, vector<8x256xf32> -> vector<8x256xf32>
    %cst_17 = arith.constant dense<0xFF800000> : vector<256xf32>
    %20 = vector.multi_reduction <maximumf>, %19, %cst_17 [0] : vector<8x256xf32> to vector<256xf32>
    %21 = vector.shape_cast %20 : vector<256xf32> to vector<1x256xf32>
    %22 = vector.broadcast %21 : vector<1x256xf32> to vector<8x256xf32>
    %23 = arith.subf %19, %22 : vector<8x256xf32>
    %24 = math.exp %23 : vector<8x256xf32>
    %cst_18 = arith.constant dense<0.000000e+00> : vector<256xf32>
    %25 = vector.multi_reduction <add>, %24, %cst_18 [0] : vector<8x256xf32> to vector<256xf32>
    %26 = vector.shape_cast %25 : vector<256xf32> to vector<1x256xf32>
    %27 = tpu.reciprocal %26 {approx = true} : vector<1x256xf32> -> vector<1x256xf32>
    %28 = vector.broadcast %27 : vector<1x256xf32> to vector<8x256xf32>
    %29 = arith.mulf %24, %28 : vector<8x256xf32>
    %cst_19 = arith.constant dense<0.000000e+00> : vector<32x256xf32>
    %30 = tpu.matmul %18, %29, %cst_19 {dimension_numbers = #tpu.dot_dimension_numbers<[0], [0], [1], [1], [0, 1, 1, 1], [], []>} : vector<8x32xf32>, vector<8x256xf32>, vector<32x256xf32> -> vector<32x256xf32>
    %31 = vector.extract_strided_slice %8 {offsets = [0, 0], sizes = [32, 256], strides = [1, 1]} : vector<64x256xf32> to vector<32x256xf32>
    %32 = arith.addf %31, %30 : vector<32x256xf32>
    %33 = arith.negf %32 : vector<32x256xf32>
    %34 = math.exp %33 : vector<32x256xf32>
    %cst_20 = arith.constant 1.000000e+00 : f32
    %35 = vector.broadcast %cst_20 : f32 to vector<32x256xf32>
    %36 = arith.addf %35, %34 : vector<32x256xf32>
    %37 = arith.divf %35, %36 : vector<32x256xf32>
    %38 = arith.mulf %32, %37 : vector<32x256xf32>
    %39 = vector.extract_strided_slice %13 {offsets = [32, 0], sizes = [32, 256], strides = [1, 1]} : vector<64x256xf32> to vector<32x256xf32>
    %40 = vector.extract_strided_slice %15 {offsets = [8, 0], sizes = [8, 32], strides = [1, 1]} : vector<16x64xf32> to vector<8x32xf32>
    %41 = vector.extract_strided_slice %15 {offsets = [8, 32], sizes = [8, 32], strides = [1, 1]} : vector<16x64xf32> to vector<8x32xf32>
    %cst_21 = arith.constant dense<0.000000e+00> : vector<8x256xf32>
    %42 = tpu.matmul %40, %39, %cst_21 {dimension_numbers = #tpu.dot_dimension_numbers<[1], [0], [0], [1], [0, 0, 1, 1], [], []>} : vector<8x32xf32>, vector<32x256xf32>, vector<8x256xf32> -> vector<8x256xf32>
    %cst_22 = arith.constant dense<0xFF800000> : vector<256xf32>
    %43 = vector.multi_reduction <maximumf>, %42, %cst_22 [0] : vector<8x256xf32> to vector<256xf32>
    %44 = vector.shape_cast %43 : vector<256xf32> to vector<1x256xf32>
    %45 = vector.broadcast %44 : vector<1x256xf32> to vector<8x256xf32>
    %46 = arith.subf %42, %45 : vector<8x256xf32>
    %47 = math.exp %46 : vector<8x256xf32>
    %cst_23 = arith.constant dense<0.000000e+00> : vector<256xf32>
    %48 = vector.multi_reduction <add>, %47, %cst_23 [0] : vector<8x256xf32> to vector<256xf32>
    %49 = vector.shape_cast %48 : vector<256xf32> to vector<1x256xf32>
    %50 = tpu.reciprocal %49 {approx = true} : vector<1x256xf32> -> vector<1x256xf32>
    %51 = vector.broadcast %50 : vector<1x256xf32> to vector<8x256xf32>
    %52 = arith.mulf %47, %51 : vector<8x256xf32>
    %cst_24 = arith.constant dense<0.000000e+00> : vector<32x256xf32>
    %53 = tpu.matmul %41, %52, %cst_24 {dimension_numbers = #tpu.dot_dimension_numbers<[0], [0], [1], [1], [0, 1, 1, 1], [], []>} : vector<8x32xf32>, vector<8x256xf32>, vector<32x256xf32> -> vector<32x256xf32>
    %54 = vector.extract_strided_slice %8 {offsets = [32, 0], sizes = [32, 256], strides = [1, 1]} : vector<64x256xf32> to vector<32x256xf32>
    %55 = arith.addf %54, %53 : vector<32x256xf32>
    %56 = arith.negf %55 : vector<32x256xf32>
    %57 = math.exp %56 : vector<32x256xf32>
    %cst_25 = arith.constant 1.000000e+00 : f32
    %58 = vector.broadcast %cst_25 : f32 to vector<32x256xf32>
    %59 = arith.addf %58, %57 : vector<32x256xf32>
    %60 = arith.divf %58, %59 : vector<32x256xf32>
    %61 = arith.mulf %55, %60 : vector<32x256xf32>
    %62 = tpu.concatenate %38, %61 in 0 : vector<32x256xf32>, vector<32x256xf32> -> vector<64x256xf32>
    %c0_26 = arith.constant 0 : index
    %c0_27 = arith.constant 0 : index
    %63 = vector.load %arg6[%c0_26, %c0_27] : memref<8x64xf32, #tpu.memory_space<vmem>>, vector<8x64xf32>
    %cst_28 = arith.constant dense<0.000000e+00> : vector<8x256xf32>
    %64 = tpu.matmul %63, %62, %cst_28 {dimension_numbers = #tpu.dot_dimension_numbers<[1], [0], [0], [1], [0, 0, 1, 1], [], []>} : vector<8x64xf32>, vector<64x256xf32>, vector<8x256xf32> -> vector<8x256xf32>
    %c0_29 = arith.constant 0 : index
    %c0_30 = arith.constant 0 : index
    %65 = vector.load %arg7[%c0_29, %c0_30] : memref<8x1xf32, #tpu.memory_space<vmem>>, vector<8x1xf32>
    %66 = vector.broadcast %65 : vector<8x1xf32> to vector<8x256xf32>
    %67 = arith.addf %64, %66 : vector<8x256xf32>
    %c0_31 = arith.constant 0 : index
    %c0_32 = arith.constant 0 : index
    %68 = vector.load %arg8[%c0_31, %c0_32] : memref<8x256xf32, #tpu.memory_space<vmem>>, vector<8x256xf32>
    tpu.vector_store %arg8[%c0_31, %c0_32], %67 {strides = array<i32>} : memref<8x256xf32, #tpu.memory_space<vmem>>, vector<8x256xf32>,
    return
  }
  func.func @transform_0(%arg0: i32) -> (i32, i32) {
    %c0_i32 = arith.constant 0 : i32
    %c0_i32_0 = arith.constant 0 : i32
    return %c0_i32, %arg0 : i32, i32
  }
  func.func @transform_1(%arg0: i32) -> (i32, i32) {
    %c0_i32 = arith.constant 0 : i32
    %c0_i32_0 = arith.constant 0 : i32
    %c0_i32_1 = arith.constant 0 : i32
    return %c0_i32, %c0_i32_0 : i32, i32
  }
  func.func @transform_2(%arg0: i32) -> (i32, i32) {
    %c0_i32 = arith.constant 0 : i32
    %c0_i32_0 = arith.constant 0 : i32
    %c0_i32_1 = arith.constant 0 : i32
    return %c0_i32, %c0_i32_0 : i32, i32
  }
  func.func @transform_3(%arg0: i32) -> (i32, i32, i32) {
    %c0_i32 = arith.constant 0 : i32
    %c0_i32_0 = arith.constant 0 : i32
    %c0_i32_1 = arith.constant 0 : i32
    %c0_i32_2 = arith.constant 0 : i32
    return %c0_i32, %c0_i32_0, %c0_i32_1 : i32, i32, i32
  }
  func.func @transform_4(%arg0: i32) -> (i32, i32) {
    %c0_i32 = arith.constant 0 : i32
    %c0_i32_0 = arith.constant 0 : i32
    %c0_i32_1 = arith.constant 0 : i32
    return %c0_i32, %c0_i32_0 : i32, i32
  }
  func.func @transform_5(%arg0: i32) -> (i32, i32) {
    %c0_i32 = arith.constant 0 : i32
    %c0_i32_0 = arith.constant 0 : i32
    %c0_i32_1 = arith.constant 0 : i32
    return %c0_i32, %c0_i32_0 : i32, i32
  }
  func.func @transform_6(%arg0: i32) -> (i32, i32) {
    %c0_i32 = arith.constant 0 : i32
    %c0_i32_0 = arith.constant 0 : i32
    %c0_i32_1 = arith.constant 0 : i32
    return %c0_i32, %c0_i32_0 : i32, i32
  }
  func.func @transform_7(%arg0: i32) -> (i32, i32) {
    %c0_i32 = arith.constant 0 : i32
    %c0_i32_0 = arith.constant 0 : i32
    return %c0_i32, %arg0 : i32, i32
  }
}

</mosaic_0001>

<bundles_post_ra>
// kernel: diffusion_wrapper_forward.1
= control target key start
LH: loop header
LB: loop body
LE: loop exit
PB: predicated region body
PF: predicated region fallthrough
CT: control target
= control target key end

     0   :  { %vm86_vm0 = vcmask 64512   ;;  %v1302_v15 = vmov 1   ;;  %vm344_vm1 = vcmask 261120   ;;  %v1303_v52 = vmov 0   ;;  %s2112_s0 = inlined_call_operand.vmem [shape: f32[8,256], index: 0, kind: input, shape index: {}]   ;;  %s2113_s3 = inlined_call_operand.vmem [shape: f32[2,64,8], index: 3, kind: input, shape index: {}]   ;;  %s2114_s4 = inlined_call_operand.vmem [shape: f32[32,64], index: 4, kind: input, shape index: {}]   ;;  %s2115_s1 = inlined_call_operand.vmem [shape: f32[64,2], index: 1, kind: input, shape index: {}]   ;;  %s2116_s2 = inlined_call_operand.vmem [shape: f32[16,32], index: 2, kind: input, shape index: {}]   ;;  %s2117_s6 = inlined_call_operand.vmem [shape: f32[8,1], index: 6, kind: input, shape index: {}]   ;;  %s2118_s5 = inlined_call_operand.vmem [shape: f32[8,64], index: 5, kind: input, shape index: {}]   ;;  %s2119_s7 = inlined_call_operand.vmem [shape: f32[8,256], index: 7, kind: output, shape index: {}]  }
   0x1   :  { %v26_v0 = vld [vmem:[%s2112_s0] sm:$0xff]  ;;  %v1354_v2 = vld [vmem:[%s2113_s3 + $0x38] sm:$0xff]  ;;  %v27_v4 = vld [vmem:[%s2112_s0 + $0x8] sm:$0xff]  ;;  %1216 = vset.pattern.permute.xlu0 %v1302_v15  ;;  %1217 = vset.pattern.permute.xlu1 %v1302_v15 }
   0x2   :  { %v38_v1 = vld [vmem:[%s2113_s3] sm:$0xff]  ;;  %126 = vmatpush.msra.mxu0 %v26_v0  ;;  %1211 = vmatpush.msra.mxu3 %v26_v0  ;;  %v343_v5 = vld [vmem:[%s2114_s4 + $0x18] sm:$0xff]  ;;  %v342_v6 = vld [vmem:[%s2114_s4 + $0x10] sm:$0xff] }
   0x3   :  { %v1147_v3 = vld [vmem:[%s2113_s3 + $0x40] sm:$0xff]  ;;  %273 = vmatpush.msra.mxu2 %v26_v0  ;;  %1131 = vmatmul.msk.f32.vlgmr.msra.gmra.mxu0 %vm86_vm0, %v38_v1  ;;  %v39_v7 = vld [vmem:[%s2113_s3 + $0x8] sm:$0xff]  ;;  %v40_v10 = vld [vmem:[%s2113_s3 + $0x10] sm:$0xff] }
   0x4   :  { %1138 = vmatmul.msk.f32.vlgmr.msra.gmra.mxu3 %vm86_vm0, %v1354_v2  ;;  %1155 = vmatmul.msk.f32.vlgmr.msra.gmra.mxu2 %vm86_vm0, %v1147_v3  ;;  %v1148_v8 = vld [vmem:[%s2113_s3 + $0x48] sm:$0xff]  ;;  %v1149_v11 = vld [vmem:[%s2113_s3 + $0x50] sm:$0xff]  ;;  %v1398_v12 = vld [vmem:[%s2115_s1 + $0x18] sm:$0xff] }
   0x5   :  { %314 = vmatpush.msrb.mxu3 %v27_v4  ;;  %363 = vmatpush.msrb.mxu0 %v343_v5  ;;  %v341_v9 = vld [vmem:[%s2114_s4 + $0x8] sm:$0xff]  ;;  %v340_v13 = vld [vmem:[%s2114_s4] sm:$0xff]  ;;  %v41_v16 = vld [vmem:[%s2113_s3 + $0x18] sm:$0xff] }
   0x6   :  { %167 = vmatpush.msra.mxu1 %v27_v4  ;;  %v1406_v14 = vld [vmem:[%s2115_s1 + $0x8] sm:$0xff]  ;;  %215 = vperm.xlu0 %1216, %v1398_v12   ;;  %v1150_v17 = vld [vmem:[%s2113_s3 + $0x58] sm:$0xff]  ;;  %v1423_v18 = vld [vmem:[%s2115_s1 + $0x10] sm:$0xff] }
   0x7   :  { %364 = vmatpush.msrb.mxu0 %v342_v6  ;;  %1139 = vmatmul.msk.f32.vlgmr.msra.gmra.mxu1 %vm86_vm0, %v38_v1  ;;  %v1428_v19 = vld [vmem:[%s2115_s1] sm:$0xff]  ;;  %v1445_v22 = vld [vmem:[%s2115_s1 + $0x28] sm:$0xff]  ;;  %v1455_v24 = vld [vmem:[%s2115_s1 + $0x38] sm:$0xff] }
   0x8   :  { %207 = vperm.xlu1 %1217, %v1406_v14   ;;  %1218 = vset.pattern.permute.xlu2 %v1302_v15  ;;  %v42_v20 = vld [vmem:[%s2113_s3 + $0x20] sm:$0xff]  ;;  %v43_v25 = vld [vmem:[%s2113_s3 + $0x28] sm:$0xff]  ;;  %v1470_v27 = vld [vmem:[%s2115_s1 + $0x30] sm:$0xff] }
   0x9   :  { %365 = vmatpush.msrb.mxu0 %v341_v9  ;;  %v1151_v21 = vld [vmem:[%s2113_s3 + $0x60] sm:$0xff]  ;;  %231 = vperm.xlu2 %1218, %v1455_v24   ;;  %v1152_v26 = vld [vmem:[%s2113_s3 + $0x68] sm:$0xff]  ;;  %v44_v28 = vld [vmem:[%s2113_s3 + $0x30] sm:$0xff] }
   0xa   :  { %v1450_v23 = vld [vmem:[%s2115_s1 + $0x20] sm:$0xff]  ;;  %v1153_v29 = vld [vmem:[%s2113_s3 + $0x70] sm:$0xff]  ;;  %v1154_v31 = vld [vmem:[%s2113_s3 + $0x78] sm:$0xff] }
   0xb   :  { %1132 = vmatmul.msk.f32.gmra.mxu0 %vm86_vm0, %v39_v7  ;;  %v28_v30 = vld [vmem:[%s2116_s2] sm:$0xff]  ;;  %v29_v32 = vld [vmem:[%s2116_s2 + $0x8] sm:$0xff]  ;;  %s1304_s2 = smov 96  }
   0xc   :  { %1156 = vmatmul.msk.f32.gmra.mxu2 %vm86_vm0, %v1148_v8  ;;  %1163 = vmatmul.msk.f32.vlgmr.msrb.gmra.mxu3 %vm86_vm0, %v1147_v3 }
   0xd   :  { %366 = vmatpush.msrb.mxu0 %v340_v13 }
   0xe   :  { %211 = vperm.xlu0 %1216, %v1423_v18  }
   0xf   :  { %1140 = vmatmul.msk.f32.gmra.mxu1 %vm86_vm0, %v39_v7 }
  0x10   :  { %203 = vperm.xlu1 %1217, %v1428_v19  }
  0x11   :  { %227 = vperm.xlu2 %1218, %v1470_v27  }
  0x13   :  { %1133 = vmatmul.msk.f32.gmra.mxu0 %vm86_vm0, %v40_v10 }
  0x14   :  { %1157 = vmatmul.msk.f32.gmra.mxu2 %vm86_vm0, %v1149_v11  ;;  %1164 = vmatmul.msk.f32.gmra.mxu3 %vm86_vm0, %v1148_v8 }
  0x16   :  { %223 = vperm.xlu0 %1216, %v1445_v22  }
  0x17   :  { %1141 = vmatmul.msk.f32.gmra.mxu1 %vm86_vm0, %v40_v10 }
  0x18   :  { %219 = vperm.xlu1 %1217, %v1450_v23  }
  0x1b   :  { %1134 = vmatmul.msk.f32.gmra.mxu0 %vm86_vm0, %v41_v16 }
  0x1c   :  { %1158 = vmatmul.msk.f32.gmra.mxu2 %vm86_vm0, %v1150_v17  ;;  %1165 = vmatmul.msk.f32.gmra.mxu3 %vm86_vm0, %v1149_v11 }
  0x1e   :  { %1219 = vset.pattern.permute.xlu0 %v1303_v52 }
  0x1f   :  { %1142 = vmatmul.msk.f32.gmra.mxu1 %vm86_vm0, %v41_v16 }
  0x23   :  { %1135 = vmatmul.msk.f32.gmra.mxu0 %vm86_vm0, %v42_v20 }
  0x24   :  { %1159 = vmatmul.msk.f32.gmra.mxu2 %vm86_vm0, %v1151_v21  ;;  %1166 = vmatmul.msk.f32.gmra.mxu3 %vm86_vm0, %v1150_v17 }
  0x27   :  { %1143 = vmatmul.msk.f32.gmra.mxu1 %vm86_vm0, %v42_v20 }
  0x2b   :  { %1136 = vmatmul.msk.f32.gmra.mxu0 %vm86_vm0, %v43_v25 }
  0x2c   :  { %1160 = vmatmul.msk.f32.gmra.mxu2 %vm86_vm0, %v1152_v26  ;;  %1167 = vmatmul.msk.f32.gmra.mxu3 %vm86_vm0, %v1151_v21 }
  0x2f   :  { %1144 = vmatmul.msk.f32.gmra.mxu1 %vm86_vm0, %v43_v25 }
  0x33   :  { %1137 = vmatmul.msk.f32.gmra.mxu0 %vm86_vm0, %v44_v28 }
  0x34   :  { %1161 = vmatmul.msk.f32.gmra.mxu2 %vm86_vm0, %v1153_v29  ;;  %1168 = vmatmul.msk.f32.gmra.mxu3 %vm86_vm0, %v1152_v26 }
  0x37   :  { %1145 = vmatmul.msk.f32.gmra.mxu1 %vm86_vm0, %v44_v28 }
  0x3b   :  { %1171 = vmatmul.msk.f32.vlgmr.msrb.gmra.mxu0 %vm344_vm1, %v28_v30 }
  0x3c   :  { %1162 = vmatmul.msk.f32.gmra.mxu2 %vm86_vm0, %v1154_v31  ;;  %1169 = vmatmul.msk.f32.gmra.mxu3 %vm86_vm0, %v1153_v29 }
  0x3f   :  { %1146 = vmatmul.msk.f32.gmra.mxu1 %vm86_vm0, %v1354_v2 }
  0x43   :  { %1172 = vmatmul.msk.f32.gmra.mxu0 %vm344_vm1, %v29_v32 }
  0x44   :  { %1170 = vmatmul.msk.f32.gmra.mxu3 %vm86_vm0, %v1154_v31 }
  0x63   :  { %v232_v1 = vpop.permute.xlu2 %231 }
  0x6b   :  { %v228_v5 = vpop.permute.xlu2 %227 }
  0x78   :  { %v216_v40 = vpop.permute.xlu0 %215 }
  0x7a   :  { %v208_v41 = vpop.permute.xlu1 %207 }
  0x80   :  { %v1503_v33 = vpop.f32.mrf.mxu0  ;;  %v212_v45 = vpop.permute.xlu0 %211 }
  0x82   :  { %v204_v51 = vpop.permute.xlu1 %203 }
  0x87   :  { %v1505_v34 = vpop.f32.mrf.mxu3  ;;  %v275_v35 = vpop.f32.mrf.mxu2 }
  0x88   :  { %v1507_v36 = vpop.f32.mrf.mxu0  ;;  %v276_v54 = vadd.f32 %v275_v35, %v204_v51  ;;  %v224_v6 = vpop.permute.xlu0 %223 }
  0x8a   :  { %v220_v13 = vpop.permute.xlu1 %219 }
  0x8f   :  { %v278_v37 = vpop.f32.mrf.mxu2  ;;  %v316_v38 = vpop.f32.mrf.mxu3 }
  0x90   :  { %v1509_v39 = vpop.f32.mrf.mxu0  ;;  %v279_v53 = vadd.f32 %v278_v37, %v208_v41  ;;  %v317_v61 = vadd.f32 %v316_v38, %v204_v51 }
  0x97   :  { %v281_v42 = vpop.f32.mrf.mxu2  ;;  %v319_v43 = vpop.f32.mrf.mxu3 }
  0x98   :  { %v1511_v44 = vpop.f32.mrf.mxu0  ;;  %v282_v50 = vadd.f32 %v281_v42, %v212_v45  ;;  %v320_v60 = vadd.f32 %v319_v43, %v208_v41 }
  0x9f   :  { %v284_v46 = vpop.f32.mrf.mxu2  ;;  %v322_v47 = vpop.f32.mrf.mxu3 }
  0xa0   :  { %v1513_v48 = vpop.f32.mrf.mxu0  ;;  %v285_v49 = vadd.f32 %v284_v46, %v216_v40  ;;  %v323_v59 = vadd.f32 %v322_v47, %v212_v45 }
  0xa2   :  { %389 = vmatpush.msrb.mxu1 %v285_v49 }
  0xa4   :  { %390 = vmatpush.msrb.mxu1 %v282_v50 }
  0xa6   :  { %391 = vmatpush.msrb.mxu1 %v279_v53 }
  0xa7   :  { %v287_v55 = vpop.f32.mrf.mxu2  ;;  %v325_v56 = vpop.f32.mrf.mxu3 }
  0xa8   :  { %v1516_v57 = vpop.f32.mrf.mxu0  ;;  %v326_v58 = vadd.f32 %v325_v56, %v216_v40  ;;  %392 = vmatpush.msrb.mxu1 %v276_v54  ;;  %v288_v16 = vadd.f32 %v287_v55, %v220_v13 }
  0xaa   :  { %409 = vmatpush.msrb.mxu2 %v326_v58 }
  0xac   :  { %410 = vmatpush.msrb.mxu2 %v323_v59 }
  0xae   :  { %411 = vmatpush.msrb.mxu2 %v320_v60 }
  0xaf   :  { %v290_v62 = vpop.f32.mrf.mxu2  ;;  %v328_v63 = vpop.f32.mrf.mxu3 }
  0xb0   :  { %v1518_v0 = vpop.f32.mrf.mxu0  ;;  %412 = vmatpush.msrb.mxu2 %v317_v61  ;;  %v291_v15 = vadd.f32 %v290_v62, %v224_v6  ;;  %v329_v26 = vadd.f32 %v328_v63, %v220_v13 }
  0xb7   :  { %v293_v2 = vpop.f32.mrf.mxu2  ;;  %v331_v3 = vpop.f32.mrf.mxu3 }
  0xb8   :  { %v368_v4 = vpop.f32.mrf.mxu0  ;;  %v294_v10 = vadd.f32 %v293_v2, %v228_v5  ;;  %v332_v25 = vadd.f32 %v331_v3, %v224_v6 }
  0xb9   :  { %451 = vrot.lane.b32.xlu0 %v368_v4, %s1304_s2  ;;  %1173 = vmatmul.msk.f32.vlgmr.msrb.gmra.mxu1 %vm344_vm1, %v368_v4 }
  0xba   :  { %1174 = vmatmul.msk.f32.vlgmr.msrb.gmra.mxu2 %vm344_vm1, %v368_v4 }
  0xbf   :  { %v296_v7 = vpop.f32.mrf.mxu2  ;;  %v334_v8 = vpop.f32.mrf.mxu3 }
  0xc0   :  { %v297_v9 = vadd.f32 %v296_v7, %v232_v1  ;;  %v371_v11 = vpop.f32.mrf.mxu0  ;;  %v335_v20 = vadd.f32 %v334_v8, %v228_v5 }
  0xc1   :  { %83 = vperm.xlu0 %1219, %v1455_v24   ;;  %801 = vrot.lane.b32.xlu2 %v371_v11, %s1304_s2  ;;  %v1529_v24 = vpop.f32.mrf.mxu1 }
  0xc2   :  { %739 = vmatpush.msra.mxu2 %v297_v9 }
  0xc4   :  { %740 = vmatpush.msra.mxu2 %v294_v10 }
  0xc6   :  { %741 = vmatpush.msra.mxu2 %v291_v15 }
  0xc7   :  { %v337_v17 = vpop.f32.mrf.mxu3 }
  0xc8   :  { %v338_v21 = vadd.f32 %v337_v17, %v232_v1  ;;  %742 = vmatpush.msra.mxu2 %v288_v16 }
  0xc9   :  { %1191 = vmatmul.msk.f32.vlgmr.msra.gmra.mxu2 %vm344_vm1, %v371_v11  ;;  %78 = vperm.xlu0 %1219, %v1470_v27   ;;  %v1532_v28 = vpop.f32.mrf.mxu1 }
  0xca   :  { %759 = vmatpush.msra.mxu0 %v338_v21 }
  0xcc   :  { %760 = vmatpush.msra.mxu0 %v335_v20 }
  0xce   :  { %761 = vmatpush.msra.mxu0 %v332_v25 }
  0xd0   :  { %762 = vmatpush.msra.mxu0 %v329_v26 }
  0xd1   :  { %1192 = vmatmul.msk.f32.vlgmr.msra.gmra.mxu0 %vm344_vm1, %v371_v11  ;;  %73 = vperm.xlu0 %1219, %v1445_v22   ;;  %v1534_v27 = vpop.f32.mrf.mxu1 }
  0xd9   :  { %63 = vperm.xlu0 %1219, %v1398_v12   ;;  %v1536_v29 = vpop.f32.mrf.mxu1 }
  0xe1   :  { %58 = vperm.xlu0 %1219, %v1423_v18   ;;  %v1538_v30 = vpop.f32.mrf.mxu1 }
  0xe9   :  { %48 = vperm.xlu0 %1219, %v1428_v19   ;;  %v1540_v31 = vpop.f32.mrf.mxu1 }
  0xf1   :  { %v1542_v22 = vpop.f32.mrf.mxu1 }
  0xf9   :  { %v1544_v18 = vpop.f32.mrf.mxu1 }
 0x11b   :  { %v802_v32 = vpop.permute.xlu2 %801 }
 0x11c   :  { %804 = vxpose.xlu1.b32.start.end [1/1] (short) (narrow) %v802_v32, 32 }
 0x12b   :  { %v452_v12 = vpop.permute.xlu0 %451 }
 0x12c   :  { %454 = vxpose.xlu2.b32.start.end [1/1] (short) (narrow) %v452_v12, 32 }
 0x136   :  { %v394_v35 = vpop.f32.mrf.mxu1 }
 0x137   :  { %v417_v19 = vrot.slane %v394_v35, 4 }
 0x139   :  { %v418_v37 = vmax.f32 %v394_v35, %v417_v19 }
 0x13b   :  { %v419_v38 = vrot.slane %v418_v37, 2 }
 0x13d   :  { %v420_v40 = vmax.f32 %v418_v37, %v419_v38  ;;  %v414_v41 = vpop.f32.mrf.mxu2 }
 0x13e   :  { %v423_v42 = vrot.slane %v414_v41, 4 }
 0x13f   :  { %v421_v43 = vrot.slane %v420_v40, 1 }
 0x140   :  { %v424_v45 = vmax.f32 %v414_v41, %v423_v42 }
 0x141   :  { %v422_v46 = vmax.f32 %v420_v40, %v421_v43 }
 0x142   :  { %v425_v47 = vrot.slane %v424_v45, 2 }
 0x143   :  { %v429_v49 = vsub.f32 %v394_v35, %v422_v46 }
 0x144   :  { %v426_v50 = vmax.f32 %v424_v45, %v425_v47 }
 0x145   :  { %v431_v51 = vmul.f32 1.442695, %v429_v49 }
 0x146   :  { %v427_v53 = vrot.slane %v426_v50, 1 }
 0x147   :  { %1222 = vpow2.f32 %v431_v51 }
 0x148   :  { %v428_v54 = vmax.f32 %v426_v50, %v427_v53 }
 0x14a   :  { %v430_v55 = vsub.f32 %v414_v41, %v428_v54 }
 0x14c   :  { %v433_v56 = vmul.f32 1.442695, %v430_v55  ;;  %v744_v58 = vpop.f32.mrf.mxu2 }
 0x14d   :  { %v1223_v59 = vpop.eup %1222  ;;  %v767_v60 = vrot.slane %v744_v58, 4 }
 0x14e   :  { %v435_v61 = vrot.slane %v1223_v59, 4  ;;  %1224 = vpow2.f32 %v433_v56  ;;  %v764_v62 = vpop.f32.mrf.mxu0 }
 0x14f   :  { %v768_v63 = vmax.f32 %v744_v58, %v767_v60  ;;  %v773_v1 = vrot.slane %v764_v62, 4 }
 0x150   :  { %v436_v2 = vadd.f32 %v1223_v59, %v435_v61 }
 0x151   :  { %v769_v3 = vrot.slane %v768_v63, 2  ;;  %v774_v4 = vmax.f32 %v764_v62, %v773_v1 }
 0x152   :  { %v437_v5 = vrot.slane %v436_v2, 2 }
 0x153   :  { %v770_v6 = vmax.f32 %v768_v63, %v769_v3  ;;  %v775_v7 = vrot.slane %v774_v4, 2 }
 0x154   :  { %v1225_v8 = vpop.eup %1224  ;;  %v438_v9 = vadd.f32 %v437_v5, %v436_v2 }
 0x155   :  { %v441_v10 = vrot.slane %v1225_v8, 4  ;;  %v771_v11 = vrot.slane %v770_v6, 1  ;;  %v776_v13 = vmax.f32 %v774_v4, %v775_v7  ;;  %v1075_v4 = vld [vmem:[%s2117_s6] sm:$0xff] }
 0x156   :  { %v439_v15 = vrot.slane %v438_v9, 1  ;;  %1078 = vperm.xlu0 %1219, %v1075_v4  }
 0x157   :  { %v772_v16 = vmax.f32 %v770_v6, %v771_v11  ;;  %v777_v17 = vrot.slane %v776_v13, 1  ;;  %v442_v20 = vadd.f32 %v1225_v8, %v441_v10  ;;  %v1569_v10 = vpop.permute.xlu0 %83 }
 0x158   :  { %v440_v21 = vadd.f32 %v439_v15, %v438_v9 }
 0x159   :  { %v779_v25 = vsub.f32 %v744_v58, %v772_v16  ;;  %v778_v26 = vmax.f32 %v776_v13, %v777_v17  ;;  %v443_v32 = vrot.slane %v442_v20, 2 }
 0x15a   :  { %1226 = vrcp.f32 %v440_v21 }
 0x15b   :  { %v781_v12 = vmul.f32 1.442695, %v779_v25  ;;  %v780_v35 = vsub.f32 %v764_v62, %v778_v26  ;;  %v444_v19 = vadd.f32 %v443_v32, %v442_v20 }
 0x15d   :  { %1228 = vpow2.f32 %v781_v12  ;;  %v783_v37 = vmul.f32 1.442695, %v780_v35  ;;  %v445_v38 = vrot.slane %v444_v19, 1 }
 0x15f   :  { %1230 = vpow2.f32 %v783_v37  ;;  %v446_v40 = vadd.f32 %v445_v38, %v444_v19  ;;  %v1571_v11 = vpop.permute.xlu0 %78 }
 0x160   :  { %v1227_v41 = vpop.eup %1226 }
 0x161   :  { %v449_v42 = vmul.f32 %v1227_v41, %v1223_v59  ;;  %1232 = vrcp.f32 %v446_v40 }
 0x163   :  { %v1229_v43 = vpop.eup %1228  ;;  %513 = vmatpush.msra.mxu3 %v449_v42 }
 0x164   :  { %v785_v45 = vrot.slane %v1229_v43, 4 }
 0x165   :  { %v1231_v46 = vpop.eup %1230 }
 0x166   :  { %v791_v47 = vrot.slane %v1231_v46, 4  ;;  %v786_v49 = vadd.f32 %v1229_v43, %v785_v45 }
 0x167   :  { %v1233_v50 = vpop.eup %1232  ;;  %v74_v13 = vpop.permute.xlu0 %73 }
 0x168   :  { %v450_v51 = vmul.f32 %v1233_v50, %v1225_v8  ;;  %v787_v53 = vrot.slane %v786_v49, 2  ;;  %v792_v54 = vadd.f32 %v1231_v46, %v791_v47 }
 0x16a   :  { %542 = vmatpush.msra.mxu1 %v450_v51  ;;  %v788_v55 = vadd.f32 %v787_v53, %v786_v49  ;;  %v793_v56 = vrot.slane %v792_v54, 2 }
 0x16c   :  { %v789_v58 = vrot.slane %v788_v55, 1  ;;  %v794_v60 = vadd.f32 %v793_v56, %v792_v54  ;;  %v144_v54 = vadd.f32 %v1516_v57, %v74_v13 }
 0x16e   :  { %v790_v61 = vadd.f32 %v789_v58, %v788_v55  ;;  %v795_v62 = vrot.slane %v794_v60, 1  ;;  %v188_v58 = vadd.f32 %v1542_v22, %v1571_v11 }
 0x16f   :  { %1221 = vset.pattern.permute.xlu1 %v1303_v52  ;;  %v1573_v15 = vpop.permute.xlu0 %63 }
 0x170   :  { %1234 = vrcp.f32 %v790_v61  ;;  %v796_v59 = vadd.f32 %v795_v62, %v794_v60 }
 0x172   :  { %1236 = vrcp.f32 %v796_v59 }
 0x176   :  { %v1235_v63 = vpop.eup %1234 }
 0x177   :  { %v799_v1 = vmul.f32 %v1235_v63, %v1229_v43  ;;  %v1575_v16 = vpop.permute.xlu0 %58  ;;  %v185_v43 = vadd.f32 %v1540_v31, %v74_v13 }
 0x178   :  { %v1237_v2 = vpop.eup %1236 }
 0x179   :  { %863 = vmatpush.msrb.mxu2 %v799_v1  ;;  %v800_v3 = vmul.f32 %v1237_v2, %v1231_v46 }
 0x17b   :  { %892 = vmatpush.msrb.mxu0 %v800_v3 }
 0x17f   :  { %v49_v25 = vpop.permute.xlu0 %48 }
 0x180   :  { %v170_v32 = vadd.f32 %v1529_v24, %v49_v25  ;;  %v129_v59 = vadd.f32 %v1503_v33, %v49_v25 }
 0x18e   :  { %53 = vperm.xlu1 %1221, %v1406_v14   ;;  %1220 = vset.pattern.permute.xlu2 %v1303_v52 }
 0x1ad   :  { %68 = vperm.xlu2 %1220, %v1450_v23  }
 0x1c0   :  { %v820_v5 = vpop.trf.xlu1 }
 0x1c1   :  { %1193 = vmatmul.msk.f32.vlgmr.msrb.gmra.mxu2 %vm86_vm0, %v820_v5  ;;  %1197 = vmatmul.msk.f32.vlgmr.msrb.gmra.mxu0 %vm86_vm0, %v820_v5 }
 0x1c5   :  { %v470_v6 = vpop.trf.xlu2 }
 0x1c6   :  { %1175 = vmatmul.msk.f32.vlgmr.msra.gmra.mxu3 %vm86_vm0, %v470_v6  ;;  %1179 = vmatmul.msk.f32.vlgmr.msra.gmra.mxu1 %vm86_vm0, %v470_v6 }
 0x1c8   :  { %v821_v14 = vpop.trf.xlu1 }
 0x1c9   :  { %1194 = vmatmul.msk.f32.gmra.mxu2 %vm86_vm0, %v821_v14  ;;  %1198 = vmatmul.msk.f32.gmra.mxu0 %vm86_vm0, %v821_v14 }
 0x1cd   :  { %v471_v23 = vpop.trf.xlu2 }
 0x1ce   :  { %1176 = vmatmul.msk.f32.gmra.mxu3 %vm86_vm0, %v471_v23  ;;  %1180 = vmatmul.msk.f32.gmra.mxu1 %vm86_vm0, %v471_v23 }
 0x1d0   :  { %v822_v52 = vpop.trf.xlu1 }
 0x1d1   :  { %1195 = vmatmul.msk.f32.gmra.mxu2 %vm86_vm0, %v822_v52  ;;  %1199 = vmatmul.msk.f32.gmra.mxu0 %vm86_vm0, %v822_v52 }
 0x1d5   :  { %v472_v7 = vpop.trf.xlu2 }
 0x1d6   :  { %1177 = vmatmul.msk.f32.gmra.mxu3 %vm86_vm0, %v472_v7  ;;  %1181 = vmatmul.msk.f32.gmra.mxu1 %vm86_vm0, %v472_v7 }
 0x1d8   :  { %v823_v8 = vpop.trf.xlu1 }
 0x1d9   :  { %1196 = vmatmul.msk.f32.gmra.mxu2 %vm86_vm0, %v823_v8  ;;  %1200 = vmatmul.msk.f32.gmra.mxu0 %vm86_vm0, %v823_v8 }
 0x1dd   :  { %v473_v9 = vpop.trf.xlu2 }
 0x1de   :  { %1178 = vmatmul.msk.f32.gmra.mxu3 %vm86_vm0, %v473_v9  ;;  %1182 = vmatmul.msk.f32.gmra.mxu1 %vm86_vm0, %v473_v9 }
 0x200   :  { %v54_v45 = vpop.permute.xlu1 %53 }
 0x201   :  { %v173_v49 = vadd.f32 %v1532_v28, %v54_v45  ;;  %v132_v4 = vadd.f32 %v1507_v36, %v54_v45 }
 0x207   :  { %v69_v17 = vpop.permute.xlu2 %68 }
 0x208   :  { %v182_v20 = vadd.f32 %v1538_v30, %v69_v17  ;;  %v141_v35 = vadd.f32 %v1513_v48, %v69_v17 }
 0x23e   :  { %v894_v21 = vpop.f32.mrf.mxu0 }
 0x23f   :  { %v1578_v26 = vadd.f32 %v894_v21, %v182_v20  ;;  %v1635_v21 = vadd.f32 %v1505_v34, %v1569_v10 }
 0x241   :  { %v1202_v12 = vmul.f32 -1.442695, %v1578_v26 }
 0x243   :  { %v544_v19 = vpop.f32.mrf.mxu1  ;;  %1238 = vpow2.f32 %v1202_v12  ;;  %v147_v12 = vadd.f32 %v1518_v0, %v1571_v11 }
 0x244   :  { %v1583_v37 = vadd.f32 %v544_v19, %v170_v32  ;;  %v865_v38 = vpop.f32.mrf.mxu2  ;;  %v191_v32 = vadd.f32 %v1544_v18, %v1569_v10  ;;  %v1647_v19 = vadd.f32 %v1511_v44, %v1573_v15  ;;  %v1656_v18 = vadd.f32 %v1536_v29, %v1573_v15 }
 0x245   :  { %v1585_v40 = vadd.f32 %v865_v38, %v141_v35  ;;  %v135_v44 = vadd.f32 %v1509_v39, %v1575_v16 }
 0x246   :  { %v1184_v41 = vmul.f32 -1.442695, %v1583_v37  ;;  %v897_v30 = vpop.f32.mrf.mxu0 }
 0x247   :  { %v1201_v42 = vmul.f32 -1.442695, %v1585_v40  ;;  %v1590_v46 = vadd.f32 %v897_v30, %v185_v43 }
 0x248   :  { %1240 = vpow2.f32 %v1184_v41 }
 0x249   :  { %1242 = vpow2.f32 %v1201_v42  ;;  %v1239_v24 = vpop.eup %1238  ;;  %v515_v48 = vpop.f32.mrf.mxu3  ;;  %v1204_v55 = vmul.f32 -1.442695, %v1590_v46  ;;  %v176_v42 = vadd.f32 %v1534_v27, %v1575_v16 }
 0x24a   :  { %v1593_v50 = vadd.f32 1.0, %v1239_v24  ;;  %v1612_v1 = vadd.f32 %v515_v48, %v129_v59 }
 0x24b   :  { %v547_v47 = vpop.f32.mrf.mxu1 }
 0x24c   :  { %v868_v51 = vpop.f32.mrf.mxu2  ;;  %v1599_v60 = vadd.f32 %v547_v47, %v173_v49  ;;  %1244 = vrcp.f32 %v1593_v50  ;;  %v1183_v6 = vmul.f32 -1.442695, %v1612_v1  ;;  %v970_v35 = vand.u32 2147483647, %v1593_v50 }
 0x24d   :  { %v1601_v61 = vadd.f32 %v868_v51, %v144_v54  ;;  %1246 = vpow2.f32 %v1204_v55  ;;  %v972_v34 = vand.u32 2147483648, %v1593_v50  ;;  %vm966_vm2 = vweird.f32 %v1593_v50 }
 0x24e   :  { %v1241_v53 = vpop.eup %1240  ;;  %v900_v56 = vpop.f32.mrf.mxu0  ;;  %v1186_v63 = vmul.f32 -1.442695, %v1599_v60  ;;  %vm1668_vm3 = vcmp.eq.f32.partialorder %v970_v35, 8.507059e+37 }
 0x24f   :  { %v1243_v31 = vpop.eup %1242  ;;  %v1604_v28 = vadd.f32 1.0, %v1241_v53  ;;  %v1606_v62 = vadd.f32 %v900_v56, %v188_v58  ;;  %v1203_v22 = vmul.f32 -1.442695, %v1601_v61  ;;  %v973_v39 = vor.u32 1.1754944e-38, %v972_v34 }
 0x250   :  { %v1609_v57 = vadd.f32 1.0, %v1243_v31 }
 0x251   :  { %1248 = vrcp.f32 %v1604_v28  ;;  %v1206_v2 = vmul.f32 -1.442695, %v1606_v62  ;;  %v518_v3 = vpop.f32.mrf.mxu3  ;;  %v622_v15 = vand.u32 2147483648, %v1604_v28  ;;  %v620_v53 = vand.u32 2147483647, %v1604_v28 }
 0x252   :  { %1250 = vrcp.f32 %v1609_v57  ;;  %v1619_v5 = vpop.eup %1244  ;;  %v1622_v14 = vadd.f32 %v518_v3, %v132_v4  ;;  %v957_v48 = vand.u32 2147483648, %v1609_v57  ;;  %vm616_vm5 = vweird.f32 %v1604_v28 }
 0x253   :  { %1252 = vpow2.f32 %v1186_v63  ;;  %v1247_v33 = vpop.eup %1246  ;;  %v962_v23 = vmul.f32 %v1619_v5, %v1593_v50  ;;  %v550_v24 = vpop.f32.mrf.mxu1  ;;  %vm967_vm4 = vweird.f32 %v1619_v5  ;;  %v955_v55 = vand.u32 2147483647, %v1609_v57 }
 0x254   :  { %1254 = vpow2.f32 %v1203_v22  ;;  %v1628_v7 = vadd.f32 1.0, %v1247_v33  ;;  %v1185_v8 = vmul.f32 -1.442695, %v1622_v14  ;;  %v871_v45 = vpop.f32.mrf.mxu2  ;;  %v623_v59 = vor.u32 1.1754944e-38, %v622_v15  ;;  %vm1695_vm6 = vmor %vm966_vm2, %vm967_vm4 }
 0x255   :  { %1256 = vpow2.f32 %v1206_v2  ;;  %v963_v17 = vsub.f32 1.0, %v962_v23  ;;  %v1688_v63 = vor.u32 1.1754944e-38, %v957_v48  ;;  %vm1710_vm7 = vcmp.eq.f32.partialorder %v620_v53, 8.507059e+37 }
 0x256   :  { %1258 = vpow2.f32 %v1183_v6  ;;  %v1002_v56 = vand.u32 2147483648, %v1628_v7  ;;  %v903_v31 = vpop.f32.mrf.mxu0  ;;  %v1000_v2 = vand.u32 2147483647, %v1628_v7  ;;  %v1703_v6 = vadd.f32 %v550_v24, %v176_v42 }
 0x257   :  { %v1626_v52 = vpop.eup %1248  ;;  %1260 = vrcp.f32 %v1628_v7  ;;  %v964_v0 = vmul.f32 %v1619_v5, %v963_v17  ;;  %vm951_vm8 = vweird.f32 %v1609_v57  ;;  %vm996_vm12 = vweird.f32 %v1628_v7 }
 0x258   :  { %v1630_v36 = vpop.eup %1250  ;;  %v612_v25 = vmul.f32 %v1626_v52, %v1604_v28  ;;  %1262 = vpow2.f32 %v1185_v8  ;;  %vm617_vm9 = vweird.f32 %v1626_v52  ;;  %v1725_v35 = vor.u32 1.1754944e-38, %v1002_v56 }
 0x259   :  { %v1253_v9 = vpop.eup %1252  ;;  %v947_v38 = vmul.f32 %v1630_v36, %v1609_v57  ;;  %v965_v51 = vadd.f32 %v1619_v5, %v964_v0  ;;  %v521_v58 = vpop.f32.mrf.mxu3  ;;  %vm952_vm10 = vweird.f32 %v1630_v36  ;;  %vm1743_vm11 = vmor %vm616_vm5, %vm617_vm9  ;;  %vm1788_vm15 = vcmp.eq.f32.partialorder %v1000_v2, 8.507059e+37 }
 0x25a   :  { %v1255_v13 = vpop.eup %1254  ;;  %v1652_v41 = vadd.f32 1.0, %v1253_v9  ;;  %v613_v43 = vsub.f32 1.0, %v612_v25  ;;  %v1715_v9 = vadd.f32 %v871_v45, %v147_v12  ;;  %v1719_v17 = vadd.f32 %v521_v58, %v135_v44  ;;  %vm1783_vm13 = vmor %vm951_vm8, %vm952_vm10 }
 0x25b   :  { %v1257_v20 = vpop.eup %1256  ;;  %v1659_v10 = vadd.f32 1.0, %v1255_v13  ;;  %v948_v49 = vsub.f32 1.0, %v947_v38  ;;  %v969_v8 = vsel %vm1695_vm6, %v1619_v5, %v965_v51  ;;  %v1717_v13 = vadd.f32 %v903_v31, %v191_v32  ;;  %v553_v42 = vpop.f32.mrf.mxu1 }
 0x25c   :  { %v1259_v30 = vpop.eup %1258  ;;  %v1661_v11 = vadd.f32 1.0, %v1257_v20  ;;  %v614_v54 = vmul.f32 %v1626_v52, %v613_v43  ;;  %v1188_v32 = vmul.f32 -1.442695, %v1703_v6  ;;  %v1205_v38 = vmul.f32 -1.442695, %v1715_v9  ;;  %v874_v43 = vpop.f32.mrf.mxu2 }
 0x25d   :  { %v1675_v47 = vpop.eup %1260  ;;  %v1677_v27 = vadd.f32 1.0, %v1259_v30  ;;  %v949_v4 = vmul.f32 %v1630_v36, %v948_v49  ;;  %v974_v30 = vsel %vm1668_vm3, %v973_v39, %v969_v8  ;;  %v1208_v29 = vmul.f32 -1.442695, %v1717_v13 }
 0x25e   :  { %1264 = vrcp.f32 %v1661_v11  ;;  %v1263_v16 = vpop.eup %1262  ;;  %v992_v22 = vmul.f32 %v1675_v47, %v1628_v7  ;;  %v615_v25 = vadd.f32 %v1626_v52, %v614_v54  ;;  %v1187_v15 = vmul.f32 -1.442695, %v1719_v17 }
 0x25f   :  { %1266 = vrcp.f32 %v1652_v41  ;;  %v1701_v33 = vadd.f32 1.0, %v1263_v16  ;;  %v605_v5 = vand.u32 2147483647, %v1677_v27  ;;  %v1736_v0 = vadd.f32 %v1630_v36, %v949_v4 }
 0x260   :  { %1268 = vrcp.f32 %v1659_v10  ;;  %v993_v12 = vsub.f32 1.0, %v992_v22  ;;  %v619_v28 = vsel %vm1743_vm11, %v1626_v52, %v615_v25  ;;  %v652_v39 = vand.u32 2147483648, %v1652_v41 }
 0x261   :  { %1270 = vrcp.f32 %v1677_v27  ;;  %v1762_v51 = vadd.f32 %v553_v42, %v1656_v18  ;;  %v1765_v53 = vadd.f32 %v874_v43, %v1635_v21  ;;  %v1768_v54 = vmul.f32 %v974_v30, %v1578_v26  ;;  %v524_v18 = vpop.f32.mrf.mxu3 }
 0x262   :  { %1272 = vrcp.f32 %v1701_v33  ;;  %v994_v16 = vmul.f32 %v1675_v47, %v993_v12  ;;  %v607_v52 = vand.u32 2147483648, %v1677_v27  ;;  %v624_v21 = vsel %vm1710_vm7, %v623_v59, %v619_v28 }
 0x263   :  { %1274 = vpow2.f32 %v1188_v32  ;;  %v1190_v22 = vmul.f32 -1.442695, %v1762_v51  ;;  %v1207_v3 = vmul.f32 -1.442695, %v1765_v53  ;;  %vm997_vm14 = vweird.f32 %v1675_v47 }
 0x264   :  { %v1705_v23 = vpop.eup %1264  ;;  %1276 = vpow2.f32 %v1205_v38  ;;  %v650_v25 = vand.u32 2147483647, %v1652_v41  ;;  %v954_v59 = vsel %vm1783_vm13, %v1630_v36, %v1736_v0  ;;  %v995_v50 = vadd.f32 %v1675_v47, %v994_v16  ;;  %vm1823_vm2 = vmor %vm996_vm12, %vm997_vm14 }
 0x265   :  { %v1721_v20 = vpop.eup %1266  ;;  %v1022_v44 = vmul.f32 %v1705_v23, %v1661_v11  ;;  %1278 = vpow2.f32 %v1208_v29  ;;  %vm646_vm0 = vweird.f32 %v1652_v41  ;;  %v1799_v38 = vor.u32 1.1754944e-38, %v652_v39 }
 0x266   :  { %v1728_v34 = vpop.eup %1268  ;;  %v642_v45 = vmul.f32 %v1721_v20, %v1652_v41  ;;  %1280 = vpow2.f32 %v1187_v15  ;;  %v1805_v42 = vadd.f32 %v524_v18, %v1647_v19  ;;  %v1808_v24 = vmul.f32 %v624_v21, %v1583_v37 }
 0x267   :  { %v1752_v48 = vpop.eup %1270  ;;  %v977_v49 = vmul.f32 %v1728_v34, %v1659_v10  ;;  %v1023_v56 = vsub.f32 1.0, %v1022_v44  ;;  %1282 = vpow2.f32 %v1190_v22  ;;  %vm1815_vm1 = vcmp.eq.f32.partialorder %v955_v55, 8.507059e+37 }
 0x268   :  { %v597_v31 = vmul.f32 %v1752_v48, %v1677_v27  ;;  %v643_v58 = vsub.f32 1.0, %v642_v45  ;;  %v1775_v4 = vpop.eup %1272  ;;  %1284 = vpow2.f32 %v1207_v3  ;;  %vm981_vm3 = vweird.f32 %v1659_v10 }
 0x269   :  { %v978_v12 = vsub.f32 1.0, %v977_v49  ;;  %v1275_v32 = vpop.eup %1274  ;;  %v1024_v30 = vmul.f32 %v1705_v23, %v1023_v56  ;;  %v627_v49 = vmul.f32 %v1775_v4, %v1701_v33  ;;  %v999_v57 = vsel %vm1823_vm2, %v1675_v47, %v995_v50 }
 0x26a   :  { %v1277_v2 = vpop.eup %1276  ;;  %v1802_v44 = vadd.f32 1.0, %v1275_v32  ;;  %v598_v45 = vsub.f32 1.0, %v597_v31  ;;  %v644_v29 = vmul.f32 %v1721_v20, %v643_v58  ;;  %vm647_vm4 = vweird.f32 %v1721_v20 }
 0x26b   :  { %v1279_v43 = vpop.eup %1278  ;;  %v1811_v15 = vadd.f32 1.0, %v1277_v2  ;;  %v979_v37 = vmul.f32 %v1728_v34, %v978_v12  ;;  %vm1026_vm5 = vweird.f32 %v1661_v11  ;;  %vm1838_vm6 = vcmp.eq.f32.partialorder %v650_v25, 8.507059e+37  ;;  %vm1875_vm10 = vmor %vm646_vm0, %vm647_vm4 }
 0x26c   :  { %v1281_v28 = vpop.eup %1280  ;;  %1286 = vrcp.f32 %v1802_v44  ;;  %v1025_v55 = vadd.f32 %v1705_v23, %v1024_v30  ;;  %vm1027_vm7 = vweird.f32 %v1705_v23  ;;  %v1844_v16 = vadd.f32 1.0, %v1279_v43 }
 0x26d   :  { %1288 = vrcp.f32 %v1811_v15  ;;  %v1189_v56 = vmul.f32 -1.442695, %v1805_v42  ;;  %v1283_v31 = vpop.eup %1282  ;;  %v645_v47 = vadd.f32 %v1721_v20, %v644_v29  ;;  %v1030_v58 = vand.u32 2147483647, %v1661_v11  ;;  %vm1865_vm9 = vmor %vm1026_vm5, %vm1027_vm7 }
 0x26e   :  { %v1032_v22 = vand.u32 2147483648, %v1661_v11  ;;  %v1850_v3 = vadd.f32 1.0, %v1281_v28  ;;  %v1285_v18 = vpop.eup %1284  ;;  %v980_v21 = vadd.f32 %v1728_v34, %v979_v37  ;;  %vm982_vm8 = vweird.f32 %v1728_v34 }
 0x26f   :  { %v628_v25 = vsub.f32 1.0, %v627_v49  ;;  %1290 = vrcp.f32 %v1844_v16  ;;  %v1004_v12 = vsel %vm1788_vm15, %v1725_v35, %v999_v57  ;;  %v599_v32 = vmul.f32 %v1752_v48, %v598_v45  ;;  %vm1895_vm11 = vmor %vm981_vm3, %vm982_vm8 }
 0x270   :  { %v985_v50 = vand.u32 2147483647, %v1659_v10  ;;  %v987_v2 = vand.u32 2147483648, %v1659_v10  ;;  %v1029_v8 = vsel %vm1865_vm9, %v1705_v23, %v1025_v55  ;;  %v1882_v45 = vadd.f32 1.0, %v1283_v31 }
 0x271   :  { %v1884_v11 = vadd.f32 1.0, %v1285_v18  ;;  %1292 = vpow2.f32 %v1189_v56  ;;  %v649_v28 = vsel %vm1875_vm10, %v1721_v20, %v645_v47  ;;  %vm1031_vm12 = vcmp.eq.f32.partialorder %v1030_v58, 8.507059e+37 }
 0x272   :  { %v1869_v43 = vpop.eup %1286  ;;  %v1033_v23 = vor.u32 1.1754944e-38, %v1032_v22  ;;  %1294 = vrcp.f32 %v1850_v3  ;;  %v984_v19 = vsel %vm1895_vm11, %v1728_v34, %v980_v21  ;;  %v629_v37 = vmul.f32 %v1775_v4, %v628_v25 }
 0x273   :  { %v1886_v29 = vpop.eup %1288  ;;  %1296 = vrcp.f32 %v1882_v45  ;;  %v1915_v10 = vsel %vm1815_vm1, %v1688_v63, %v954_v59  ;;  %v988_v49 = vor.u32 1.1754944e-38, %v987_v2  ;;  %v672_v34 = vmul.f32 %v1869_v43, %v1802_v44 }
 0x274   :  { %v1007_v20 = vmul.f32 %v1886_v29, %v1811_v15  ;;  %v1034_v57 = vsel %vm1031_vm12, %v1033_v23, %v1029_v8  ;;  %v1920_v56 = vadd.f32 %v1752_v48, %v599_v32  ;;  %vm986_vm14 = vcmp.eq.f32.partialorder %v985_v50, 8.507059e+37 }
 0x275   :  { %v1291_v55 = vpop.eup %1290  ;;  %v1060_v26 = vand.u32 2147483647, %v1844_v16  ;;  %1298 = vrcp.f32 %v1884_v11  ;;  %v1925_v36 = vmul.f32 %v1004_v12, %v1590_v46  ;;  %v1930_v63 = vsel %vm1838_vm6, %v1799_v38, %v649_v28 }
 0x276   :  { %v1932_v0 = vsel %vm986_vm14, %v988_v49, %v984_v19  ;;  %v1052_v59 = vmul.f32 %v1291_v55, %v1844_v16  ;;  %v1936_v31 = vmul.f32 %v1034_v57, %v1606_v62  ;;  %v1939_v47 = vadd.f32 %v1775_v4, %v629_v37 }
 0x277   :  { %v1293_v39 = vpop.eup %1292  ;;  %v1008_v58 = vsub.f32 1.0, %v1007_v20  ;;  %v1062_v46 = vand.u32 2147483648, %v1844_v16  ;;  %v673_v18 = vsub.f32 1.0, %v672_v34  ;;  %v680_v38 = vand.u32 2147483647, %v1802_v44 }
 0x278   :  { %v1942_v22 = vpop.eup %1294  ;;  %v682_v7 = vand.u32 2147483648, %v1802_v44  ;;  %v1053_v21 = vsub.f32 1.0, %v1052_v59  ;;  %vm1011_vm13 = vweird.f32 %v1811_v15  ;;  %v1015_v62 = vand.u32 2147483647, %v1811_v15 }
 0x279   :  { %v1946_v25 = vpop.eup %1296  ;;  %v1017_v12 = vand.u32 2147483648, %v1811_v15  ;;  %vm1056_vm15 = vweird.f32 %v1844_v16  ;;  %vm1952_vm0 = vcmp.eq.f32.partialorder %v1060_v26, 8.507059e+37  ;;  %vm676_vm1 = vweird.f32 %v1802_v44 }
 0x27a   :  { %v1054_v50 = vmul.f32 %v1291_v55, %v1053_v21  ;;  %vm1057_vm2 = vweird.f32 %v1291_v55  ;;  %v702_v2 = vmul.f32 %v1946_v25, %v1882_v45  ;;  %v1959_v30 = vadd.f32 1.0, %v1293_v39 }
 0x27b   :  { %v1299_v35 = vpop.eup %1298  ;;  %vm677_vm3 = vweird.f32 %v1869_v43  ;;  %v1009_v8 = vmul.f32 %v1886_v29, %v1008_v58  ;;  %v1063_v28 = vor.u32 1.1754944e-38, %v1062_v46  ;;  %v657_v41 = vmul.f32 %v1942_v22, %v1850_v3  ;;  %vm1058_vm5 = vmor %vm1056_vm15, %vm1057_vm2 }
 0x27c   :  { %v674_v23 = vmul.f32 %v1869_v43, %v673_v18  ;;  %vm1012_vm4 = vweird.f32 %v1886_v29  ;;  %v1055_v19 = vadd.f32 %v1291_v55, %v1054_v50  ;;  %v703_v37 = vsub.f32 1.0, %v702_v2 }
 0x27d   :  { %vm706_vm6 = vweird.f32 %v1882_v45  ;;  %v710_v20 = vand.u32 2147483647, %v1882_v45  ;;  %v712_v49 = vand.u32 2147483648, %v1882_v45  ;;  %v1037_v57 = vmul.f32 %v1299_v35, %v1884_v11  ;;  %vm1999_vm12 = vmor %vm1011_vm13, %vm1012_vm4 }
 0x27e   :  { %v1059_v34 = vsel %vm1058_vm5, %v1291_v55, %v1055_v19  ;;  %v704_v26 = vmul.f32 %v1946_v25, %v703_v37  ;;  %vm707_vm7 = vweird.f32 %v1946_v25  ;;  %1300 = vrcp.f32 %v1959_v30  ;;  %vm2016_vm13 = vmor %vm676_vm1, %vm677_vm3 }
 0x27f   :  { %v1010_v59 = vadd.f32 %v1886_v29, %v1009_v8  ;;  %v1064_v16 = vsel %vm1952_vm0, %v1063_v28, %v1059_v34  ;;  %v658_v39 = vsub.f32 1.0, %v657_v41  ;;  %v1038_v58 = vsub.f32 1.0, %v1037_v57  ;;  %vm1990_vm10 = vmor %vm706_vm6, %vm707_vm7 }
 0x280   :  { %vm632_vm8 = vweird.f32 %v1775_v4  ;;  %v675_v46 = vadd.f32 %v1869_v43, %v674_v23  ;;  %v1073_v18 = vmul.f32 %v1064_v16, %v1717_v13  ;;  %v705_v55 = vadd.f32 %v1946_v25, %v704_v26 }
 0x281   :  { %v1047_v21 = vand.u32 2147483648, %v1884_v11  ;;  %vm1984_vm9 = vcmp.eq.f32.partialorder %v680_v38, 8.507059e+37  ;;  %v1039_v2 = vmul.f32 %v1299_v35, %v1038_v58  ;;  %vm1042_vm11 = vweird.f32 %v1299_v35 }
 0x282   :  { %v1045_v8 = vand.u32 2147483647, %v1884_v11  ;;  %v683_v28 = vor.u32 1.1754944e-38, %v682_v7  ;;  %vm2003_vm14 = vcmp.eq.f32.partialorder %v1015_v62, 8.507059e+37  ;;  %v709_v45 = vsel %vm1990_vm10, %v1946_v25, %v705_v55  ;;  %1113 = vmatpush.msrb.mxu1 %v1073_v18 }
 0x283   :  { %vm1041_vm15 = vweird.f32 %v1884_v11  ;;  %vm602_vm0 = vweird.f32 %v1752_v48  ;;  %v1014_v7 = vsel %vm1999_vm12, %v1886_v29, %v1010_v59  ;;  %v659_v62 = vmul.f32 %v1942_v22, %v658_v39 }
 0x284   :  { %v713_v25 = vor.u32 1.1754944e-38, %v712_v49  ;;  %v1040_v41 = vadd.f32 %v1299_v35, %v1039_v2  ;;  %v1301_v11 = vpop.eup %1300  ;;  %v679_v23 = vsel %vm2016_vm13, %v1869_v43, %v675_v46  ;;  %v1018_v19 = vor.u32 1.1754944e-38, %v1017_v12  ;;  %vm1043_vm1 = vmor %vm1041_vm15, %vm1042_vm11  ;;  %1114 = vmatpush.msrb.mxu1 %v1936_v31 }
 0x285   :  { %vm711_vm2 = vcmp.eq.f32.partialorder %v710_v20, 8.507059e+37  ;;  %v1048_v44 = vor.u32 1.1754944e-38, %v1047_v21  ;;  %vm601_vm3 = vweird.f32 %v1677_v27  ;;  %vm1046_vm4 = vcmp.eq.f32.partialorder %v1045_v8, 8.507059e+37 }
 0x286   :  { %v714_v37 = vsel %vm711_vm2, %v713_v25, %v709_v45  ;;  %v1044_v29 = vsel %vm1043_vm1, %v1299_v35, %v1040_v41  ;;  %v687_v49 = vmul.f32 %v1301_v11, %v1959_v30  ;;  %v1019_v57 = vsel %vm2003_vm14, %v1018_v19, %v1014_v7  ;;  %1115 = vmatpush.msrb.mxu1 %v1925_v36  ;;  %vm2084_vm13 = vmor %vm601_vm3, %vm602_vm0 }
 0x287   :  { %vm661_vm5 = vweird.f32 %v1850_v3  ;;  %vm662_vm6 = vweird.f32 %v1942_v22  ;;  %v1049_v43 = vsel %vm1046_vm4, %v1048_v44, %v1044_v29  ;;  %v684_v31 = vsel %vm1984_vm9, %v683_v28, %v679_v23 }
 0x288   :  { %v660_v12 = vadd.f32 %v1942_v22, %v659_v62  ;;  %v1072_v35 = vmul.f32 %v1049_v43, %v1765_v53  ;;  %v688_v20 = vsub.f32 1.0, %v687_v49  ;;  %v665_v34 = vand.u32 2147483647, %v1850_v3  ;;  %1116 = vmatpush.msrb.mxu1 %v1768_v54  ;;  %vm2055_vm10 = vmor %vm661_vm5, %vm662_vm6 }
 0x289   :  { %v667_v26 = vand.u32 2147483648, %v1850_v3  ;;  %v723_v59 = vmul.f32 %v714_v37, %v1762_v51  ;;  %v697_v16 = vand.u32 2147483648, %v1959_v30  ;;  %v1070_v36 = vmul.f32 %v1019_v57, %v1715_v9 }
 0x28a   :  { %v689_v39 = vmul.f32 %v1301_v11, %v688_v20  ;;  %vm692_vm7 = vweird.f32 %v1301_v11  ;;  %v695_v58 = vand.u32 2147483647, %v1959_v30  ;;  %1093 = vmatpush.msrb.mxu3 %v1072_v35  ;;  %vm631_vm9 = vweird.f32 %v1701_v33 }
 0x28b   :  { %v635_v53 = vand.u32 2147483647, %v1701_v33  ;;  %v637_v46 = vand.u32 2147483648, %v1701_v33  ;;  %v721_v18 = vmul.f32 %v684_v31, %v1703_v6  ;;  %1117 = vmatpush.msrb.mxu1 %v723_v59  ;;  %v1068_v9 = vmul.f32 %v1932_v0, %v1601_v61  ;;  %vm2063_vm11 = vmor %vm631_vm9, %vm632_vm8 }
 0x28c   :  { %v664_v33 = vsel %vm2055_vm10, %v1942_v22, %v660_v12  ;;  %v690_v6 = vadd.f32 %v1301_v11, %v689_v39  ;;  %vm691_vm12 = vweird.f32 %v1959_v30  ;;  %1094 = vmatpush.msrb.mxu3 %v1070_v36  ;;  %v1066_v3 = vmul.f32 %v1915_v10, %v1585_v40 }
 0x28d   :  { %v719_v61 = vmul.f32 %v1930_v63, %v1599_v60  ;;  %v668_v0 = vor.u32 1.1754944e-38, %v667_v26  ;;  %vm693_vm8 = vmor %vm691_vm12, %vm692_vm7  ;;  %v698_v55 = vor.u32 1.1754944e-38, %v697_v16  ;;  %1118 = vmatpush.msrb.mxu1 %v721_v18  ;;  %v634_v22 = vsel %vm2063_vm11, %v1775_v4, %v1939_v47  ;;  %v1074_v4 = vld [vmem:[%s2118_s5] sm:$0xff] }
 0x28e   :  { %vm666_vm14 = vcmp.eq.f32.partialorder %v665_v34, 8.507059e+37  ;;  %v694_v21 = vsel %vm693_vm8, %v1301_v11, %v690_v6  ;;  %vm696_vm15 = vcmp.eq.f32.partialorder %v695_v58, 8.507059e+37  ;;  %1095 = vmatpush.msrb.mxu3 %v1068_v9  ;;  %v638_v60 = vor.u32 1.1754944e-38, %v637_v46 }
 0x28f   :  { %v669_v10 = vsel %vm666_vm14, %v668_v0, %v664_v33  ;;  %v699_v63 = vsel %vm696_vm15, %v698_v55, %v694_v21  ;;  %1119 = vmatpush.msrb.mxu1 %v719_v61  ;;  %vm1081_vm2 = vcmask 523264   ;;  %v604_v47 = vsel %vm2084_vm13, %v1752_v48, %v1920_v56 }
 0x290   :  { %vm636_vm1 = vcmp.eq.f32.partialorder %v635_v53, 8.507059e+37  ;;  %v722_v30 = vmul.f32 %v699_v63, %v1805_v42  ;;  %1096 = vmatpush.msrb.mxu3 %v1066_v3  ;;  %v608_v50 = vor.u32 1.1754944e-38, %v607_v52  ;;  %vm606_vm0 = vcmp.eq.f32.partialorder %v605_v5, 8.507059e+37  ;;  %v1079_v52 = vpop.permute.xlu0 %1078 }
 0x291   :  { %v639_v32 = vsel %vm636_vm1, %v638_v60, %v634_v22  ;;  %1120 = vmatpush.msrb.mxu1 %v1808_v24  ;;  %v720_v2 = vmul.f32 %v669_v10, %v1719_v17 }
 0x292   :  { %1097 = vmatpush.msrb.mxu3 %v722_v30  ;;  %1210 = vmatmul.msk.f32.vlgmr.msrb.gmra.mxu1 %vm1081_vm2, %v1074_v4  ;;  %v609_v8 = vsel %vm606_vm0, %v608_v50, %v604_v47  ;;  %v718_v48 = vmul.f32 %v639_v32, %v1622_v14 }
 0x293   :  { %v716_v42 = vmul.f32 %v609_v8, %v1612_v1 }
 0x294   :  { %1098 = vmatpush.msrb.mxu3 %v720_v2 }
 0x296   :  { %1099 = vmatpush.msrb.mxu3 %v718_v48 }
 0x298   :  { %1100 = vmatpush.msrb.mxu3 %v716_v42 }
 0x299   :  { %1209 = vmatmul.msk.f32.vlgmr.msrb.gmra.mxu3 %vm1081_vm2, %v1074_v4 }
 0x30f   :  { %v1122_v24 = vpop.f32.mrf.mxu1 }
 0x310   :  { %v1123_v56 = vadd.f32 %v1122_v24, %v1079_v52 }
 0x312   :  { %1126 = vst [vmem:[%s2119_s7 + $0x8] sm:$0xff] %v1123_v56 }
 0x31c   :  { %v1102_v27 = vpop.f32.mrf.mxu3 }
 0x31d   :  { %v1103_v17 = vadd.f32 %v1102_v27, %v1079_v52 }
 0x31f   :  { %1125 = vst [vmem:[%s2119_s7] sm:$0xff] %v1103_v17 }

</bundles_post_ra>
